<compile_context>
chip_gen: v6e
topology: v6e:2x2x1
jax: 0.10.0
libtpu: 0.0.40
codegen_flags: <defaults>
</compile_context>

<pallas_src>
import jax
import jax.numpy as jnp
from jax.experimental import pallas as pl
from jax.experimental.pallas import tpu as pltpu


def mixture_kernel(x_ref, mu_ref, neg_log_norm_ref, inv_b_ref, log_pi_ref, seg_ref, out_ref):
    x = x_ref[...]                                   # (TILE_N, D)
    K = log_pi_ref.shape[1]                          # static

    # --- NaN handling on the narrow (TILE_N, D) tile (1/K of the slab work) ---
    nan_mask = jnp.isnan(x)
    xz = jnp.where(nan_mask, 0.0, x)                 # torch: X[X_nan] = 0
    valid = (~nan_mask).astype(jnp.float32)          # 0/1 validity mask

    # --- replicate the cleaned tile and mask onto the K*D (=128) lane slab ---
    xs = jnp.tile(xz, (1, K))                        # (TILE_N, K*D)
    vs = jnp.tile(valid, (1, K))                     # (TILE_N, K*D)

    # --- elementwise log-density: log p = -(ln2+b) - |x - mu| * exp(-b) -------
    # NaN features: xz = 0 keeps the term finite, then *valid zeros it (log(1) = 0).
    term = (neg_log_norm_ref[...] - jnp.abs(xs - mu_ref[...]) * inv_b_ref[...]) * vs

    # --- segmented sum over D per component on the MXU ------------------------
    # (TILE_N, K*D) @ (K*D, K) block-diagonal ones -> (TILE_N, K).
    # Precision pinned: the default would truncate the f32 LHS to bf16.
    logp = jnp.dot(term, seg_ref[...],
                   preferred_element_type=jnp.float32,
                   precision=jax.lax.Precision.HIGHEST)

    # --- logsumexp over components with log pi folded in ----------------------
    # TODO(synk): repack z into full 128-lane vregs (strided rolls on the XLU) so the
    # K=4-lane-wide max/exp/sum runs on dense vregs instead of ~3% lane utilization.
    z = logp + log_pi_ref[...]                       # (TILE_N, K)
    m = jnp.max(z, axis=1, keepdims=True)
    lse = m + jnp.log(jnp.sum(jnp.exp(z - m), axis=1, keepdims=True))   # (TILE_N, 1)

    # --- per-tile partial sum, written to this tile's own lane-dense block ----
    tile_sum = jnp.sum(lse)
    out_ref[...] = jnp.full(out_ref.shape, tile_sum, dtype=out_ref.dtype)


def mixture_forward(X, mu, b, pi, *, tile_n=4096):
    """X: (N, D); mu, b: (D, K); pi: (K,)  (PyTorch parameter layout). Returns scalar."""
    X = jnp.asarray(X, jnp.float32)
    mu = jnp.asarray(mu, jnp.float32)
    b = jnp.asarray(b, jnp.float32)
    pi = jnp.asarray(pi, jnp.float32)
    N, D = X.shape
    K = pi.shape[0]

    # Hoisted parameter transforms: parameter-sized EUP/VPU work, done once outside.
    mu_row = mu.T.reshape(1, K * D)                               # block k = mu[:, k]
    neg_log_norm_row = -(jnp.log(2.0) + b).T.reshape(1, K * D)    # -log(2*exp(b)) = -(ln2+b)
    inv_b_row = jnp.exp(-b).T.reshape(1, K * D)                   # 1 / exp(b)
    log_pi = jax.nn.log_softmax(pi).reshape(1, K)
    seg = jnp.repeat(jnp.eye(K, dtype=jnp.float32), D, axis=0)    # (K*D, K) block-diag ones

    # Grid over N.  Pad with NaN rows: an all-NaN row gives logp == 0 for every component,
    # so its logsumexp is logsumexp(log_softmax(pi)) == 0 -> (near-)zero contribution.
    if N <= tile_n:
        tile_n = max(8, -(-N // 8) * 8)
    n_pad = -(-N // tile_n) * tile_n
    if n_pad != N:
        X = jnp.concatenate(
            [X, jnp.full((n_pad - N, D), jnp.nan, jnp.float32)], axis=0)
    num_tiles = n_pad // tile_n

    # Per-tile partial sums land in a lane-dense (8, 128*num_tiles) slab: tile i owns the
    # (8, 128) column block i (satisfies the (8,128) block constraint, unmasked stores).
    out = pl.pallas_call(
        mixture_kernel,
        out_shape=jax.ShapeDtypeStruct((8, 128 * num_tiles), jnp.float32),
        grid_spec=pltpu.PrefetchScalarGridSpec(
            num_scalar_prefetch=0,
            grid=(num_tiles,),
            in_specs=[
                pl.BlockSpec((tile_n, D), lambda i: (i, 0)),      # X tile (pipelined)
                pl.BlockSpec((1, K * D), lambda i: (0, 0)),       # mu_row
                pl.BlockSpec((1, K * D), lambda i: (0, 0)),       # -(ln2 + b)
                pl.BlockSpec((1, K * D), lambda i: (0, 0)),       # exp(-b)
                pl.BlockSpec((1, K), lambda i: (0, 0)),           # log_softmax(pi)
                pl.BlockSpec((K * D, K), lambda i: (0, 0)),       # segment matrix
            ],
            out_specs=pl.BlockSpec((8, 128), lambda i: (0, i)),   # tile i -> column block i
        ),
        compiler_params=pltpu.CompilerParams(
            dimension_semantics=("parallel",),        # independent tiles -> megacore on v7x
            vmem_limit_bytes=32 * 1024 * 1024,        # ~16 MiB used at tile_n=4096
        ),
    )(X, mu_row, neg_log_norm_row, inv_b_row, log_pi, seg)

    # Reduce the per-tile partials in the wrapper (each block holds its tile sum broadcast).
    partials = out.reshape(8, num_tiles, 128)[0, :, 0]            # (num_tiles,)
    return jnp.sum(partials)


def _reference_forward(X, mu, b, pi):
    """Pure-JAX log-space reference (same math as the PyTorch module)."""
    log_pi = jax.nn.log_softmax(pi)                               # (K,)
    nan_mask = jnp.isnan(X)
    Xz = jnp.where(nan_mask, 0.0, X)
    term = (-(jnp.log(2.0) + b)[None, :, :]
            - jnp.abs(Xz[:, :, None] - mu[None, :, :]) * jnp.exp(-b)[None, :, :])
    term = jnp.where(nan_mask[:, :, None], 0.0, term)             # (N, D, K)
    loglik = term.sum(axis=1) + log_pi[None, :]                   # (N, K)
    return jax.scipy.special.logsumexp(loglik, axis=1).sum()


if __name__ == "__main__":
    key = jax.random.PRNGKey(0)
    N, D, K = 8, 32, 4
    kx, knan, kmu, kb, kpi = jax.random.split(key, 5)

    # data with a few NaNs to exercise the missing-data path
    X = jax.random.normal(kx, (N, D), jnp.float32)
    nan_pos = jax.random.uniform(knan, (N, D)) < 0.1
    X = jnp.where(nan_pos, jnp.nan, X)

    # deterministic parameter init (analogue of np.random.rand in __init__)
    mu = jax.random.uniform(kmu, (D, K), jnp.float32)
    b = jax.random.uniform(kb, (D, K), jnp.float32)
    pi = jax.random.uniform(kpi, (K,), jnp.float32)

    out = mixture_forward(X, mu, b, pi)
    jax.block_until_ready(out)

    ref = _reference_forward(X, mu, b, pi)
    assert jnp.isfinite(out), "kernel produced non-finite log-likelihood"
    assert jnp.allclose(out, ref, rtol=1e-3, atol=1e-2), (out, ref)
    print("KERNEL_OK")
</pallas_src>

<mosaic_0001>
module attributes {stable_mosaic.version = 11 : i64} {
  func.func @mixture_kernel(%arg0: i32, %arg1: memref<8x32xf32, #tpu.memory_space<vmem>>, %arg2: memref<1x128xf32, #tpu.memory_space<vmem>>, %arg3: memref<1x128xf32, #tpu.memory_space<vmem>>, %arg4: memref<1x128xf32, #tpu.memory_space<vmem>>, %arg5: memref<1x4xf32, #tpu.memory_space<vmem>>, %arg6: memref<128x4xf32, #tpu.memory_space<vmem>>, %arg7: memref<8x128xf32, #tpu.memory_space<vmem>>) attributes {dimension_semantics = [#tpu.dimension_semantics<parallel>], iteration_bounds = array<i64: 1>, scalar_prefetch = 0 : i64, scratch_operands = 0 : i64, tpu.core_type = #tpu.core_type<tc>, window_params = [{transform_indices = @transform_0, window_bounds = array<i64: 8, 32>}, {pipeline_mode = #tpu.pipeline_mode<synchronous>, transform_indices = @transform_1, window_bounds = array<i64: 1, 128>}, {pipeline_mode = #tpu.pipeline_mode<synchronous>, transform_indices = @transform_2, window_bounds = array<i64: 1, 128>}, {pipeline_mode = #tpu.pipeline_mode<synchronous>, transform_indices = @transform_3, window_bounds = array<i64: 1, 128>}, {pipeline_mode = #tpu.pipeline_mode<synchronous>, transform_indices = @transform_4, window_bounds = array<i64: 1, 4>}, {pipeline_mode = #tpu.pipeline_mode<synchronous>, transform_indices = @transform_5, window_bounds = array<i64: 128, 4>}, {transform_indices = @transform_6, window_bounds = array<i64: 8, 128>}]} {
    %c0 = arith.constant 0 : index
    %c0_0 = arith.constant 0 : index
    %0 = vector.load %arg1[%c0, %c0_0] : memref<8x32xf32, #tpu.memory_space<vmem>>, vector<8x32xf32>
    %1 = arith.cmpf one, %0, %0 : vector<8x32xf32>
    %cst = arith.constant 0.000000e+00 : f32
    %2 = vector.broadcast %cst : f32 to vector<8x32xf32>
    %3 = arith.select %1, %2, %0 : vector<8x32xi1>, vector<8x32xf32>
    %cst_1 = arith.constant dense<true> : vector<8x32xi1>
    %4 = arith.xori %1, %cst_1 : vector<8x32xi1>
    %5 = arith.extui %4 : vector<8x32xi1> to vector<8x32xi32>
    %6 = arith.sitofp %5 : vector<8x32xi32> to vector<8x32xf32>
    %7 = tpu.concatenate %3, %3, %3, %3 in 1 : vector<8x32xf32>, vector<8x32xf32>, vector<8x32xf32>, vector<8x32xf32> -> vector<8x128xf32>
    %8 = tpu.concatenate %6, %6, %6, %6 in 1 : vector<8x32xf32>, vector<8x32xf32>, vector<8x32xf32>, vector<8x32xf32> -> vector<8x128xf32>
    %c0_2 = arith.constant 0 : index
    %c0_3 = arith.constant 0 : index
    %9 = vector.load %arg3[%c0_2, %c0_3] : memref<1x128xf32, #tpu.memory_space<vmem>>, vector<1x128xf32>
    %c0_4 = arith.constant 0 : index
    %c0_5 = arith.constant 0 : index
    %10 = vector.load %arg2[%c0_4, %c0_5] : memref<1x128xf32, #tpu.memory_space<vmem>>, vector<1x128xf32>
    %11 = vector.broadcast %10 : vector<1x128xf32> to vector<8x128xf32>
    %12 = arith.subf %7, %11 : vector<8x128xf32>
    %13 = math.absf %12 : vector<8x128xf32>
    %c0_6 = arith.constant 0 : index
    %c0_7 = arith.constant 0 : index
    %14 = vector.load %arg4[%c0_6, %c0_7] : memref<1x128xf32, #tpu.memory_space<vmem>>, vector<1x128xf32>
    %15 = vector.broadcast %14 : vector<1x128xf32> to vector<8x128xf32>
    %16 = arith.mulf %13, %15 : vector<8x128xf32>
    %17 = vector.broadcast %9 : vector<1x128xf32> to vector<8x128xf32>
    %18 = arith.subf %17, %16 : vector<8x128xf32>
    %19 = arith.mulf %18, %8 : vector<8x128xf32>
    %c0_8 = arith.constant 0 : index
    %c0_9 = arith.constant 0 : index
    %20 = vector.load %arg6[%c0_8, %c0_9] : memref<128x4xf32, #tpu.memory_space<vmem>>, vector<128x4xf32>
    %cst_10 = arith.constant dense<0.000000e+00> : vector<8x4xf32>
    %21 = tpu.matmul %19, %20, %cst_10 {dimension_numbers = #tpu.dot_dimension_numbers<[1], [0], [0], [1], [0, 0, 1, 1], [], []>, precision = #tpu.contract_precision<fp32>} : vector<8x128xf32>, vector<128x4xf32>, vector<8x4xf32> -> vector<8x4xf32>
    %c0_11 = arith.constant 0 : index
    %c0_12 = arith.constant 0 : index
    %22 = vector.load %arg5[%c0_11, %c0_12] : memref<1x4xf32, #tpu.memory_space<vmem>>, vector<1x4xf32>
    %23 = vector.broadcast %22 : vector<1x4xf32> to vector<8x4xf32>
    %24 = arith.addf %21, %23 : vector<8x4xf32>
    %cst_13 = arith.constant dense<0xFF800000> : vector<8xf32>
    %25 = vector.multi_reduction <maximumf>, %24, %cst_13 [1] : vector<8x4xf32> to vector<8xf32>
    %26 = vector.shape_cast %25 : vector<8xf32> to vector<8x1xf32>
    %27 = vector.broadcast %26 : vector<8x1xf32> to vector<8x4xf32>
    %28 = arith.subf %24, %27 : vector<8x4xf32>
    %29 = math.exp %28 : vector<8x4xf32>
    %cst_14 = arith.constant dense<0.000000e+00> : vector<8xf32>
    %30 = vector.multi_reduction <add>, %29, %cst_14 [1] : vector<8x4xf32> to vector<8xf32>
    %31 = vector.shape_cast %30 : vector<8xf32> to vector<8x1xf32>
    %32 = math.log %31 : vector<8x1xf32>
    %33 = arith.addf %26, %32 : vector<8x1xf32>
    %34 = vector.shape_cast %33 : vector<8x1xf32> to vector<1x8x1xf32>
    %cst_15 = arith.constant dense<0.000000e+00> : vector<1xf32>
    %35 = vector.multi_reduction <add>, %34, %cst_15 [1, 2] : vector<1x8x1xf32> to vector<1xf32>
    %36 = vector.shape_cast %35 : vector<1xf32> to vector<1x1x1xf32>
    %37 = vector.extract %36[0, 0, 0] : f32 from vector<1x1x1xf32>
    %38 = vector.broadcast %37 : f32 to vector<8x128xf32>
    %c0_16 = arith.constant 0 : index
    %c0_17 = arith.constant 0 : index
    %39 = vector.load %arg7[%c0_16, %c0_17] : memref<8x128xf32, #tpu.memory_space<vmem>>, vector<8x128xf32>
    tpu.vector_store %arg7[%c0_16, %c0_17], %38 {strides = array<i32>} : memref<8x128xf32, #tpu.memory_space<vmem>>, vector<8x128xf32>,
    return
  }
  func.func @transform_0(%arg0: i32) -> (i32, i32) {
    %c0_i32 = arith.constant 0 : i32
    %c0_i32_0 = arith.constant 0 : i32
    return %arg0, %c0_i32 : i32, i32
  }
  func.func @transform_1(%arg0: i32) -> (i32, i32) {
    %c0_i32 = arith.constant 0 : i32
    %c0_i32_0 = arith.constant 0 : i32
    %c0_i32_1 = arith.constant 0 : i32
    return %c0_i32, %c0_i32_0 : i32, i32
  }
  func.func @transform_2(%arg0: i32) -> (i32, i32) {
    %c0_i32 = arith.constant 0 : i32
    %c0_i32_0 = arith.constant 0 : i32
    %c0_i32_1 = arith.constant 0 : i32
    return %c0_i32, %c0_i32_0 : i32, i32
  }
  func.func @transform_3(%arg0: i32) -> (i32, i32) {
    %c0_i32 = arith.constant 0 : i32
    %c0_i32_0 = arith.constant 0 : i32
    %c0_i32_1 = arith.constant 0 : i32
    return %c0_i32, %c0_i32_0 : i32, i32
  }
  func.func @transform_4(%arg0: i32) -> (i32, i32) {
    %c0_i32 = arith.constant 0 : i32
    %c0_i32_0 = arith.constant 0 : i32
    %c0_i32_1 = arith.constant 0 : i32
    return %c0_i32, %c0_i32_0 : i32, i32
  }
  func.func @transform_5(%arg0: i32) -> (i32, i32) {
    %c0_i32 = arith.constant 0 : i32
    %c0_i32_0 = arith.constant 0 : i32
    %c0_i32_1 = arith.constant 0 : i32
    return %c0_i32, %c0_i32_0 : i32, i32
  }
  func.func @transform_6(%arg0: i32) -> (i32, i32) {
    %c0_i32 = arith.constant 0 : i32
    %c0_i32_0 = arith.constant 0 : i32
    return %c0_i32, %arg0 : i32, i32
  }
}

</mosaic_0001>

<bundles_post_ra>
// kernel: tpu_custom_call.1
= control target key start
LH: loop header
LB: loop body
LE: loop exit
PB: predicated region body
PF: predicated region fallthrough
CT: control target
= control target key end

     0   :  { %v1141_v2 = vmov 0.0   ;;  %vm1142_vm1 = vmmov 1   ;;  %s1143_s10 = smov 32   ;;  %s1144_s11 = smov 96   ;;  %s1625_s0 = inlined_call_operand.vmem [shape: f32[8,32], index: 0, kind: input, shape index: {}]   ;;  %s1626_s1 = inlined_call_operand.vmem [shape: f32[1,128], index: 1, kind: input, shape index: {}]   ;;  %s1627_s2 = inlined_call_operand.vmem [shape: f32[1,128], index: 2, kind: input, shape index: {}]   ;;  %s1628_s3 = inlined_call_operand.vmem [shape: f32[1,128], index: 3, kind: input, shape index: {}]   ;;  %s1629_s4 = inlined_call_operand.vmem [shape: f32[1,4], index: 4, kind: input, shape index: {}]   ;;  %s1630_s5 = inlined_call_operand.vmem [shape: f32[128,4], index: 5, kind: input, shape index: {}]   ;;  %s1631_s6 = inlined_call_operand.hbm [shape: f32[8,128], index: 6, kind: output, shape index: {}]  }
   0x1   :  { %v24_v0 = vld [vmem:[%s1625_s0] sm:$0xff]  ;;  %v100_v1 = vld [vmem:[%s1630_s5 + $0x78] sm:$0xff]  ;;  %931 = vmatprep.subr.mxu1 %v1141_v2  ;;  %v99_v4 = vld [vmem:[%s1630_s5 + $0x70] sm:$0xff]  ;;  %896 = vmatprep.subr.mxu0 %v1141_v2  ;;  %s1145_s16 = smov 64  }
   0x2   :  { %vm25_vm0 = vcmp.ne.f32.partialorder %v24_v0, %v24_v0  ;;  %v1190_v3 = vand.u32 4294901760, %v100_v1  ;;  %v98_v5 = vld [vmem:[%s1630_s5 + $0x68] sm:$0xff]  ;;  %v97_v6 = vld [vmem:[%s1630_s5 + $0x60] sm:$0xff]  ;;  %v1204_v8 = vand.u32 4294901760, %v99_v4  ;;  %v96_v11 = vld [vmem:[%s1630_s5 + $0x58] sm:$0xff] }
   0x3   :  { %v1202_v7 = vsel %vm25_vm0, 0.0, %v24_v0  ;;  %vm27_vm2 = vmxor %vm25_vm0, %vm1142_vm1  ;;  %v1206_v9 = vand.u32 4294901760, %v98_v5  ;;  %v1208_v10 = vand.u32 4294901760, %v97_v6  ;;  %v95_v12 = vld [vmem:[%s1630_s5 + $0x50] sm:$0xff]  ;;  %v1225_v15 = vand.u32 4294901760, %v96_v11  ;;  %v94_v17 = vld [vmem:[%s1630_s5 + $0x48] sm:$0xff] }
   0x4   :  { %31 = vrot.lane.b32.xlu0 %v1202_v7, %s1143_s10  ;;  %37 = vrot.lane.b32.xlu1 %v1202_v7, %s1144_s11  ;;  %v1220_v13 = vsel %vm27_vm2, 1.0, %v1141_v2  ;;  %v1223_v14 = vsub.f32 %v100_v1, %v1190_v3  ;;  %v1227_v16 = vand.u32 4294901760, %v95_v12  ;;  %v93_v18 = vld [vmem:[%s1630_s5 + $0x40] sm:$0xff]  ;;  %v1236_v19 = vsub.f32 %v99_v4, %v1204_v8  ;;  %v92_v35 = vld [vmem:[%s1630_s5 + $0x38] sm:$0xff] }
   0x5   :  { %v1239_v20 = vsub.f32 %v98_v5, %v1206_v9  ;;  %v1242_v21 = vsub.f32 %v97_v6, %v1208_v10  ;;  %897 = vmatpush3.msra.mxu0 %v1190_v3  ;;  %v1245_v22 = vand.u32 4294901760, %v94_v17  ;;  %v1249_v24 = vsub.f32 %v96_v11, %v1225_v15 }
   0x6   :  { %v202_v23 = vand.u32 4294901760, %v1223_v14  ;;  %898 = vmatprep.subr.mxu0 %v1141_v2  ;;  %v1252_v25 = vand.u32 4294901760, %v93_v18  ;;  %v209_v26 = vand.u32 4294901760, %v1236_v19  ;;  %v1259_v29 = vsub.f32 %v95_v12, %v1227_v16 }
   0x7   :  { %v216_v27 = vand.u32 4294901760, %v1239_v20  ;;  %v223_v28 = vand.u32 4294901760, %v1242_v21  ;;  %899 = vmatpush3.msra.mxu0 %v1204_v8  ;;  %v1267_v31 = vsub.f32 %v94_v17, %v1245_v22  ;;  %v230_v34 = vand.u32 4294901760, %v1249_v24 }
   0x8   :  { %34 = vrot.lane.b32.xlu0 %v1202_v7, %s1145_s16  ;;  %47 = vrot.lane.b32.xlu1 %v1220_v13, %s1143_s10  ;;  %v203_v30 = vsub.f32 %v1223_v14, %v202_v23  ;;  %v210_v32 = vsub.f32 %v1236_v19, %v209_v26 }
   0x9   :  { %v217_v33 = vsub.f32 %v1239_v20, %v216_v27  ;;  %900 = vmatprep.subr.mxu0 %v1141_v2 }
   0xa   :  { %11 = vsyncpa [#allocation3], 0  ;;  %v204_v36 = vand.u32 4294901760, %v203_v30  ;;  %901 = vmatpush3.msra.mxu0 %v1206_v9  ;;  %v1282_v37 = vsub.f32 %v93_v18, %v1252_v25  ;;  %v91_v38 = vld [vmem:[%s1630_s5 + $0x30] sm:$0xff]  ;;  %v211_v39 = vand.u32 4294901760, %v210_v32  ;;  %v224_v40 = vsub.f32 %v1242_v21, %v223_v28  ;;  %v90_v42 = vld [vmem:[%s1630_s5 + $0x28] sm:$0xff] }
   0xb   :  { %v237_v41 = vand.u32 4294901760, %v1259_v29  ;;  %902 = vmatprep.subr.mxu0 %v1141_v2  ;;  %v244_v43 = vand.u32 4294901760, %v1267_v31  ;;  %v1299_v44 = vand.u32 4294901760, %v92_v35  ;;  %v89_v45 = vld [vmem:[%s1630_s5 + $0x20] sm:$0xff]  ;;  %v218_v46 = vand.u32 4294901760, %v217_v33  ;;  %v88_v52 = vld [vmem:[%s1630_s5 + $0x18] sm:$0xff] }
   0xc   :  { %50 = vrot.lane.b32.xlu0 %v1220_v13, %s1145_s16  ;;  %53 = vrot.lane.b32.xlu1 %v1220_v13, %s1144_s11  ;;  %v231_v47 = vsub.f32 %v1249_v24, %v230_v34  ;;  %v1308_v48 = vand.u32 4294901760, %v91_v38  ;;  %v251_v49 = vand.u32 4294901760, %v1282_v37  ;;  %v1316_v51 = vand.u32 4294901760, %v90_v42  ;;  %v87_v58 = vld [vmem:[%s1630_s5 + $0x10] sm:$0xff]  ;;  %v86_v0 = vld [vmem:[%s1630_s5 + $0x8] sm:$0xff] }
   0xd   :  { %932 = vmatpush3.msra.mxu1 %v204_v36  ;;  %903 = vmatpush3.msra.mxu0 %v1208_v10  ;;  %v1314_v50 = vsub.f32 %v92_v35, %v1299_v44  ;;  %v225_v53 = vand.u32 4294901760, %v224_v40  ;;  %v238_v54 = vsub.f32 %v1259_v29, %v237_v41  ;;  %v1328_v56 = vand.u32 4294901760, %v89_v45  ;;  %v85_v12 = vld [vmem:[%s1630_s5] sm:$0xff] }
   0xe   :  { %933 = vmatprep.subr.mxu1 %v1141_v2  ;;  %904 = vmatprep.subr.mxu0 %v1141_v2  ;;  %v1326_v55 = vsub.f32 %v91_v38, %v1308_v48  ;;  %v245_v57 = vsub.f32 %v1267_v31, %v244_v43  ;;  %v232_v59 = vand.u32 4294901760, %v231_v47  ;;  %v1341_v61 = vsub.f32 %v90_v42, %v1316_v51 }
   0xf   :  { %934 = vmatpush3.msra.mxu1 %v211_v39  ;;  %905 = vmatpush3.msra.mxu0 %v1225_v15  ;;  %v258_v60 = vand.u32 4294901760, %v1314_v50  ;;  %v1343_v62 = vand.u32 4294901760, %v88_v52  ;;  %v252_v63 = vsub.f32 %v1282_v37, %v251_v49  ;;  %v239_v1 = vand.u32 4294901760, %v238_v54 }
  0x10   :  { %935 = vmatprep.subr.mxu1 %v1141_v2  ;;  %906 = vmatprep.subr.mxu0 %v1141_v2  ;;  %v265_v4 = vand.u32 4294901760, %v1326_v55  ;;  %v1356_v5 = vsub.f32 %v89_v45, %v1328_v56  ;;  %v1358_v6 = vand.u32 4294901760, %v87_v58  ;;  %v246_v11 = vand.u32 4294901760, %v245_v57 }
  0x11   :  { %936 = vmatpush3.msra.mxu1 %v218_v46  ;;  %907 = vmatpush3.msra.mxu0 %v1227_v16  ;;  %v259_v17 = vsub.f32 %v1314_v50, %v258_v60  ;;  %v272_v18 = vand.u32 4294901760, %v1341_v61  ;;  %v1371_v30 = vsub.f32 %v88_v52, %v1343_v62  ;;  %v1373_v32 = vand.u32 4294901760, %v86_v0 }
  0x12   :  { %937 = vmatprep.subr.mxu1 %v1141_v2  ;;  %908 = vmatprep.subr.mxu0 %v1141_v2  ;;  %v253_v33 = vand.u32 4294901760, %v252_v63  ;;  %v266_v35 = vsub.f32 %v1326_v55, %v265_v4  ;;  %v279_v36 = vand.u32 4294901760, %v1356_v5  ;;  %v1383_v38 = vsub.f32 %v87_v58, %v1358_v6 }
  0x13   :  { %938 = vmatpush3.msra.mxu1 %v225_v53  ;;  %909 = vmatpush3.msra.mxu0 %v1245_v22  ;;  %v1385_v39 = vand.u32 4294901760, %v85_v12  ;;  %v260_v40 = vand.u32 4294901760, %v259_v17  ;;  %v273_v42 = vsub.f32 %v1341_v61, %v272_v18  ;;  %v286_v45 = vand.u32 4294901760, %v1371_v30 }
  0x14   :  { %939 = vmatprep.subr.mxu1 %v1141_v2  ;;  %910 = vmatprep.subr.mxu0 %v1141_v2  ;;  %v1395_v46 = vsub.f32 %v86_v0, %v1373_v32  ;;  %v267_v47 = vand.u32 4294901760, %v266_v35  ;;  %v280_v52 = vsub.f32 %v1356_v5, %v279_v36  ;;  %v293_v53 = vand.u32 4294901760, %v1383_v38 }
  0x15   :  { %940 = vmatpush3.msra.mxu1 %v232_v59  ;;  %911 = vmatpush3.msra.mxu0 %v1252_v25  ;;  %v1405_v54 = vsub.f32 %v85_v12, %v1385_v39  ;;  %v274_v57 = vand.u32 4294901760, %v273_v42  ;;  %v287_v58 = vsub.f32 %v1371_v30, %v286_v45  ;;  %vm1146_vm3 = vmmov 0  }
  0x16   :  { %941 = vmatprep.subr.mxu1 %v1141_v2  ;;  %912 = vmatprep.subr.mxu0 %v1141_v2  ;;  %v1633_v59 = vand.u32 4294901760, %v1395_v46  ;;  %v281_v63 = vand.u32 4294901760, %v280_v52  ;;  %v294_v0 = vsub.f32 %v1383_v38, %v293_v53  ;;  %vm40_vm4 = vcmask 261120  }
  0x17   :  { %942 = vmatpush3.msra.mxu1 %v239_v1  ;;  %913 = vmatpush3.msra.mxu0 %v1299_v44  ;;  %v1632_v1 = vand.u32 4294901760, %v1405_v54  ;;  %vm42_vm5 = vcmask 523264   ;;  %vm44_vm6 = vcmask 785408   ;;  %vm749_vm7 = vcmask 31744  }
  0x18   :  { %943 = vmatprep.subr.mxu1 %v1141_v2  ;;  %914 = vmatprep.subr.mxu0 %v1141_v2  ;;  %v301_v12 = vsub.f32 %v1395_v46, %v1633_v59  ;;  %v295_v17 = vand.u32 4294901760, %v294_v0  ;;  %vm762_vm8 = vcmask 7168  }
  0x19   :  { %944 = vmatpush3.msra.mxu1 %v246_v11  ;;  %915 = vmatpush3.msra.mxu0 %v1308_v48  ;;  %v288_v11 = vand.u32 4294901760, %v287_v58 }
  0x1a   :  { %945 = vmatprep.subr.mxu1 %v1141_v2  ;;  %916 = vmatprep.subr.mxu0 %v1141_v2  ;;  %v302_v35 = vand.u32 4294901760, %v301_v12 }
  0x1b   :  { %946 = vmatpush3.msra.mxu1 %v253_v33  ;;  %917 = vmatpush3.msra.mxu0 %v1316_v51  ;;  %v308_v33 = vsub.f32 %v1405_v54, %v1632_v1 }
  0x1c   :  { %947 = vmatprep.subr.mxu1 %v1141_v2  ;;  %918 = vmatprep.subr.mxu0 %v1141_v2 }
  0x1d   :  { %948 = vmatpush3.msra.mxu1 %v260_v40  ;;  %919 = vmatpush3.msra.mxu0 %v1328_v56  ;;  %v309_v40 = vand.u32 4294901760, %v308_v33 }
  0x1e   :  { %949 = vmatprep.subr.mxu1 %v1141_v2  ;;  %920 = vmatprep.subr.mxu0 %v1141_v2 }
  0x1f   :  { %950 = vmatpush3.msra.mxu1 %v267_v47  ;;  %963 = vmatprep.mubr.msk.f32.mxu1 %vm1146_vm3, %v1141_v2 }
  0x20   :  { %951 = vmatprep.subr.mxu1 %v1141_v2  ;;  %921 = vmatpush3.msra.mxu0 %v1343_v62 }
  0x21   :  { %952 = vmatpush3.msra.mxu1 %v274_v57  ;;  %922 = vmatprep.subr.mxu0 %v1141_v2  ;;  %v790_v57 = vld [vmem:[%s1626_s1] ss:$0 sm:$0xff] }
  0x22   :  { %953 = vmatprep.subr.mxu1 %v1141_v2  ;;  %923 = vmatpush3.msra.mxu0 %v1358_v6 }
  0x23   :  { %954 = vmatpush3.msra.mxu1 %v281_v63  ;;  %924 = vmatprep.subr.mxu0 %v1141_v2 }
  0x24   :  { %955 = vmatprep.subr.mxu1 %v1141_v2  ;;  %925 = vmatpush3.msra.mxu0 %v1373_v32 }
  0x25   :  { %956 = vmatpush3.msra.mxu1 %v288_v11  ;;  %926 = vmatprep.subr.mxu0 %v1141_v2 }
  0x26   :  { %957 = vmatprep.subr.mxu1 %v1141_v2  ;;  %927 = vmatpush3.msra.mxu0 %v1385_v39 }
  0x27   :  { %958 = vmatpush3.msra.mxu1 %v295_v17  ;;  %928 = vmatprep.mubr.msk.f32.mxu0 %vm1146_vm3, %v1141_v2 }
  0x28   :  { %959 = vmatprep.subr.mxu1 %v1141_v2  ;;  %966 = vmatprep.subr.mxu0 %v1141_v2 }
  0x29   :  { %960 = vmatpush3.msra.mxu1 %v302_v35  ;;  %v791_v35 = vld [vmem:[%s1628_s3] ss:$0 sm:$0xff]  ;;  %s1147_s3 = smov [#allocation2]  }
  0x2a   :  { %961 = vmatprep.subr.mxu1 %v1141_v2 }
  0x2b   :  { %962 = vmatpush3.msra.mxu1 %v309_v40 }
  0x2c   :  { %1001 = vmatprep.subr.mxu1 %v1141_v2 }
  0x76   :  { %v32_v42 = vpop.permute.xlu0 %31  ;;  %v38_v47 = vpop.permute.xlu1 %37 }
  0x77   :  { %v41_v52 = vsel %vm40_vm4, %v1202_v7, %v32_v42  ;;  %v792_v7 = vld [vmem:[%s1627_s2] ss:$0 sm:$0xff] }
  0x7a   :  { %v35_v58 = vpop.permute.xlu0 %34  ;;  %v48_v0 = vpop.permute.xlu1 %47 }
  0x7b   :  { %v43_v63 = vsel %vm42_vm5, %v41_v52, %v35_v58  ;;  %v56_v17 = vsel %vm40_vm4, %v1220_v13, %v48_v0 }
  0x7c   :  { %v45_v11 = vsel %vm44_vm6, %v43_v63, %v38_v47 }
  0x7d   :  { %v67_v12 = vsub.f32 %v45_v11, %v790_v57 }
  0x7e   :  { %v51_v33 = vpop.permute.xlu0 %50  ;;  %v54_v1 = vpop.permute.xlu1 %53 }
  0x7f   :  { %v68_v40 = vand.u32 2147483647, %v67_v12  ;;  %v57_v42 = vsel %vm42_vm5, %v56_v17, %v51_v33 }
  0x80   :  { %v58_v58 = vsel %vm44_vm6, %v57_v42, %v54_v1 }
  0x81   :  { %v76_v59 = vmul.f32 %v791_v35, %v68_v40 }
  0x83   :  { %v83_v52 = vsub.f32 %v792_v7, %v76_v59 }
  0x85   :  { %v84_v47 = vmul.f32 %v83_v52, %v58_v58 }
  0x87   :  { %v1458_v57 = vand.u32 4294901760, %v84_v47 }
  0x89   :  { %v1461_v13 = vsub.f32 %v84_v47, %v1458_v57  ;;  %964 = vmatmul.mubr.f32.vlgmr.msra.gmra.mxu1 %v1458_v57 }
  0x8a   :  { %1002 = vmatpush3.msra.mxu1 %v1190_v3  ;;  %1033 = vmatprep.mubr.msk.f32.mxu1 %vm1146_vm3, %v1141_v2 }
  0x8b   :  { %1003 = vmatprep.subr.mxu1 %v1141_v2  ;;  %v191_v63 = vand.u32 4294901760, %v1461_v13 }
  0x8c   :  { %1004 = vmatpush3.msra.mxu1 %v1204_v8 }
  0x8d   :  { %1005 = vmatprep.subr.mxu1 %v1141_v2  ;;  %v192_v59 = vsub.f32 %v1461_v13, %v191_v63 }
  0x8e   :  { %1006 = vmatpush3.msra.mxu1 %v1206_v9 }
  0x8f   :  { %1007 = vmatprep.subr.mxu1 %v1141_v2  ;;  %v193_v1 = vand.u32 4294901760, %v192_v59 }
  0x90   :  { %1008 = vmatpush3.msra.mxu1 %v1208_v10 }
  0x91   :  { %1009 = vmatprep.subr.mxu1 %v1141_v2  ;;  %929 = vmatmul.mubr.f32.vlgmr.msra.gmra.mxu0 %v193_v1 }
  0x92   :  { %967 = vmatpush3.msra.mxu0 %v1223_v14  ;;  %1010 = vmatpush3.msra.mxu1 %v1225_v15 }
  0x93   :  { %968 = vmatprep.subr.mxu0 %v1141_v2  ;;  %1011 = vmatprep.subr.mxu1 %v1141_v2 }
  0x94   :  { %969 = vmatpush3.msra.mxu0 %v1236_v19  ;;  %1012 = vmatpush3.msra.mxu1 %v1227_v16 }
  0x95   :  { %970 = vmatprep.subr.mxu0 %v1141_v2  ;;  %1013 = vmatprep.subr.mxu1 %v1141_v2 }
  0x96   :  { %971 = vmatpush3.msra.mxu0 %v1239_v20  ;;  %1014 = vmatpush3.msra.mxu1 %v1245_v22 }
  0x97   :  { %972 = vmatprep.subr.mxu0 %v1141_v2  ;;  %1015 = vmatprep.subr.mxu1 %v1141_v2 }
  0x98   :  { %973 = vmatpush3.msra.mxu0 %v1242_v21  ;;  %1016 = vmatpush3.msra.mxu1 %v1252_v25 }
  0x99   :  { %974 = vmatprep.subr.mxu0 %v1141_v2  ;;  %1017 = vmatprep.subr.mxu1 %v1141_v2 }
  0x9a   :  { %975 = vmatpush3.msra.mxu0 %v1249_v24  ;;  %1018 = vmatpush3.msra.mxu1 %v1299_v44 }
  0x9b   :  { %976 = vmatprep.subr.mxu0 %v1141_v2  ;;  %1019 = vmatprep.subr.mxu1 %v1141_v2 }
  0x9c   :  { %977 = vmatpush3.msra.mxu0 %v1259_v29  ;;  %1020 = vmatpush3.msra.mxu1 %v1308_v48 }
  0x9d   :  { %978 = vmatprep.subr.mxu0 %v1141_v2  ;;  %1021 = vmatprep.subr.mxu1 %v1141_v2 }
  0x9e   :  { %979 = vmatpush3.msra.mxu0 %v1267_v31  ;;  %1022 = vmatpush3.msra.mxu1 %v1316_v51 }
  0x9f   :  { %980 = vmatprep.subr.mxu0 %v1141_v2  ;;  %1023 = vmatprep.subr.mxu1 %v1141_v2 }
  0xa0   :  { %981 = vmatpush3.msra.mxu0 %v1282_v37  ;;  %1024 = vmatpush3.msra.mxu1 %v1328_v56 }
  0xa1   :  { %982 = vmatprep.subr.mxu0 %v1141_v2  ;;  %1025 = vmatprep.subr.mxu1 %v1141_v2 }
  0xa2   :  { %983 = vmatpush3.msra.mxu0 %v1314_v50  ;;  %1026 = vmatpush3.msra.mxu1 %v1343_v62 }
  0xa3   :  { %984 = vmatprep.subr.mxu0 %v1141_v2  ;;  %1027 = vmatprep.subr.mxu1 %v1141_v2 }
  0xa4   :  { %985 = vmatpush3.msra.mxu0 %v1326_v55  ;;  %1028 = vmatpush3.msra.mxu1 %v1358_v6 }
  0xa5   :  { %986 = vmatprep.subr.mxu0 %v1141_v2  ;;  %1029 = vmatprep.subr.mxu1 %v1141_v2 }
  0xa6   :  { %987 = vmatpush3.msra.mxu0 %v1341_v61  ;;  %1030 = vmatpush3.msra.mxu1 %v1373_v32 }
  0xa7   :  { %988 = vmatprep.subr.mxu0 %v1141_v2  ;;  %1031 = vmatprep.subr.mxu1 %v1141_v2 }
  0xa8   :  { %989 = vmatpush3.msra.mxu0 %v1356_v5  ;;  %1032 = vmatpush3.msra.mxu1 %v1385_v39 }
  0xa9   :  { %990 = vmatprep.subr.mxu0 %v1141_v2  ;;  %1034 = vmatmul.mubr.f32.vlgmr.msra.gmra.mxu1 %v191_v63 }
  0xaa   :  { %1071 = vmatprep.subr.mxu1 %v1141_v2  ;;  %991 = vmatpush3.msra.mxu0 %v1371_v30 }
  0xab   :  { %1072 = vmatpush3.msra.mxu1 %v1190_v3  ;;  %992 = vmatprep.subr.mxu0 %v1141_v2  ;;  %v1634_v3 = vand.u32 4294901760, %v1395_v46 }
  0xac   :  { %1073 = vmatprep.subr.mxu1 %v1141_v2  ;;  %993 = vmatpush3.msra.mxu0 %v1383_v38 }
  0xad   :  { %1074 = vmatpush3.msra.mxu1 %v1204_v8  ;;  %994 = vmatprep.subr.mxu0 %v1141_v2  ;;  %v1635_v8 = vand.u32 4294901760, %v1405_v54 }
  0xae   :  { %1075 = vmatprep.subr.mxu1 %v1141_v2  ;;  %995 = vmatpush3.msra.mxu0 %v1395_v46 }
  0xaf   :  { %1076 = vmatpush3.msra.mxu1 %v1206_v9  ;;  %996 = vmatprep.subr.mxu0 %v1141_v2 }
  0xb0   :  { %1077 = vmatprep.subr.mxu1 %v1141_v2  ;;  %997 = vmatpush3.msra.mxu0 %v1405_v54 }
  0xb1   :  { %998 = vmatprep.mubr.msk.f32.mxu0 %vm1146_vm3, %v1141_v2  ;;  %1078 = vmatpush3.msra.mxu1 %v1208_v10 }
  0xb2   :  { %999 = vmatmul.mubr.f32.vlgmr.msra.gmra.mxu0 %v1461_v13  ;;  %1036 = vmatprep.subr.mxu0 %v1141_v2 }
  0xb3   :  { %1079 = vmatprep.subr.mxu1 %v1141_v2  ;;  %1037 = vmatpush3.msra.mxu0 %v202_v23 }
  0xb4   :  { %1080 = vmatpush3.msra.mxu1 %v1225_v15  ;;  %1038 = vmatprep.subr.mxu0 %v1141_v2 }
  0xb5   :  { %1081 = vmatprep.subr.mxu1 %v1141_v2  ;;  %1039 = vmatpush3.msra.mxu0 %v209_v26 }
  0xb6   :  { %1082 = vmatpush3.msra.mxu1 %v1227_v16  ;;  %1040 = vmatprep.subr.mxu0 %v1141_v2 }
  0xb7   :  { %1083 = vmatprep.subr.mxu1 %v1141_v2  ;;  %1041 = vmatpush3.msra.mxu0 %v216_v27 }
  0xb8   :  { %1084 = vmatpush3.msra.mxu1 %v1245_v22  ;;  %1042 = vmatprep.subr.mxu0 %v1141_v2  ;;  %v793_v22 = vld [vmem:[%s1629_s4] ss:$0 sm:$0xff]  ;;  %s781_s4 = sshll.u32 %s1147_s3, 4  ;;  %s782_s4 = int_to_ptr.vmem [resolvable:$true] %s781_s4 }
  0xb9   :  { %1085 = vmatprep.subr.mxu1 %v1141_v2  ;;  %1043 = vmatpush3.msra.mxu0 %v223_v28  ;;  %s1119_s14 = scalar_lea.vmem %s782_s4, 128  ;;  %p1124_p1 = scmp.lt.s32.totalorder %s782_s4, %s782_s4 }
  0xba   :  { %1086 = vmatpush3.msra.mxu1 %v1252_v25  ;;  %1044 = vmatprep.subr.mxu0 %v1141_v2  ;;  %p1120_p0 = scmp.ne.s32.totalorder %s782_s4, %s1119_s14  ;;  %p1125_p2 = scmp.lt.s32.totalorder %s1119_s14, %s1119_s14 }
  0xbb   :  { %1087 = vmatprep.subr.mxu1 %v1141_v2  ;;  %1045 = vmatpush3.msra.mxu0 %v230_v34 }
  0xbc   :  { %1088 = vmatpush3.msra.mxu1 %v1299_v44  ;;  %1046 = vmatprep.subr.mxu0 %v1141_v2  ;;  %p1126_p3 = por %p1125_p2, %p1124_p1 }
  0xbd   :  { %1089 = vmatprep.subr.mxu1 %v1141_v2  ;;  %1047 = vmatpush3.msra.mxu0 %v237_v41 }
  0xbe   :  { %1090 = vmatpush3.msra.mxu1 %v1308_v48  ;;  %1048 = vmatprep.subr.mxu0 %v1141_v2  ;;  %p1127_p4 = pnand %p1126_p3, %p1120_p0 }
  0xbf   :  { %1091 = vmatprep.subr.mxu1 %v1141_v2  ;;  %1049 = vmatpush3.msra.mxu0 %v244_v43 }
  0xc0   :  { %1092 = vmatpush3.msra.mxu1 %v1316_v51  ;;  %1050 = vmatprep.subr.mxu0 %v1141_v2 }
  0xc1   :  { %1093 = vmatprep.subr.mxu1 %v1141_v2  ;;  %1051 = vmatpush3.msra.mxu0 %v251_v49 }
  0xc2   :  { %1094 = vmatpush3.msra.mxu1 %v1328_v56  ;;  %1052 = vmatprep.subr.mxu0 %v1141_v2 }
  0xc3   :  { %1095 = vmatprep.subr.mxu1 %v1141_v2  ;;  %1053 = vmatpush3.msra.mxu0 %v258_v60 }
  0xc4   :  { %1096 = vmatpush3.msra.mxu1 %v1343_v62  ;;  %1054 = vmatprep.subr.mxu0 %v1141_v2 }
  0xc5   :  { %1097 = vmatprep.subr.mxu1 %v1141_v2  ;;  %1055 = vmatpush3.msra.mxu0 %v265_v4 }
  0xc6   :  { %1098 = vmatpush3.msra.mxu1 %v1358_v6  ;;  %1056 = vmatprep.subr.mxu0 %v1141_v2 }
  0xc7   :  { %1099 = vmatprep.subr.mxu1 %v1141_v2  ;;  %1057 = vmatpush3.msra.mxu0 %v272_v18 }
  0xc8   :  { %1100 = vmatpush3.msra.mxu1 %v1373_v32  ;;  %1058 = vmatprep.subr.mxu0 %v1141_v2 }
  0xc9   :  { %1101 = vmatprep.subr.mxu1 %v1141_v2  ;;  %1059 = vmatpush3.msra.mxu0 %v279_v36 }
  0xca   :  { %1102 = vmatpush3.msra.mxu1 %v1385_v39  ;;  %1103 = vmatprep.mubr.msk.f32.mxu1 %vm1146_vm3, %v1141_v2 }
  0xcb   :  { %1060 = vmatprep.subr.mxu0 %v1141_v2  ;;  %1104 = vmatmul.mubr.f32.vlgmr.msra.gmra.mxu1 %v1458_v57 }
  0xcc   :  { %1061 = vmatpush3.msra.mxu0 %v286_v45  ;;  %1068 = vmatprep.mubr.msk.f32.mxu0 %vm1146_vm3, %v1141_v2 }
  0xcd   :  { %1062 = vmatprep.subr.mxu0 %v1141_v2 }
  0xce   :  { %1063 = vmatpush3.msra.mxu0 %v293_v53 }
  0xcf   :  { %1064 = vmatprep.subr.mxu0 %v1141_v2 }
  0xd0   :  { %1065 = vmatpush3.msra.mxu0 %v1634_v3 }
  0xd1   :  { %1066 = vmatprep.subr.mxu0 %v1141_v2 }
  0xd2   :  { %1067 = vmatpush3.msra.mxu0 %v1635_v8 }
  0xd3   :  { %1069 = vmatmul.mubr.f32.vlgmr.msra.gmra.mxu0 %v1458_v57 }
 0x149   :  { %v346_v9 = vpop.f32.mrf.mxu1 }
 0x14b   :  { %v965_v10 = vpop.f32.mrf.mxu1 }
 0x151   :  { %v195_v14 = vpop.f32.mrf.mxu0 }
 0x152   :  { %v196_v23 = vadd.f32 %v793_v22, %v195_v14 }
 0x153   :  { %v930_v15 = vpop.f32.mrf.mxu0 }
 0x154   :  { %v347_v2 = vadd.f32 %v346_v9, %v196_v23 }
 0x169   :  { %v539_v16 = vpop.f32.mrf.mxu1 }
 0x16b   :  { %v1035_v19 = vpop.f32.mrf.mxu1 }
 0x172   :  { %v450_v20 = vpop.f32.mrf.mxu0 }
 0x173   :  { %v451_v26 = vadd.f32 %v450_v20, %v347_v2 }
 0x174   :  { %v1000_v21 = vpop.f32.mrf.mxu0 }
 0x175   :  { %v540_v27 = vadd.f32 %v539_v16, %v451_v26 }
 0x18b   :  { %v745_v24 = vpop.f32.mrf.mxu1 }
 0x18d   :  { %v1105_v25 = vpop.f32.mrf.mxu1 }
 0x193   :  { %v658_v28 = vpop.f32.mrf.mxu0 }
 0x194   :  { %v659_v29 = vadd.f32 %v658_v28, %v540_v27 }
 0x195   :  { %v1070_v31 = vpop.f32.mrf.mxu0 }
 0x196   :  { %v746_v34 = vadd.f32 %v745_v24, %v659_v29 }
 0x198   :  { %v750_v37 = vsel %vm749_vm7, %v746_v34, -inf }
 0x199   :  { %751 = vmax.xlane.f32.xlu0 %v750_v37 }
 0x222   :  { %v752_v41 = vpop.xlane.xlu0 %751 }
 0x223   :  { %v753_v43 = vsub.f32 %v746_v34, %v752_v41 }
 0x225   :  { %v754_v44 = vmul.f32 1.442695, %v753_v43 }
 0x227   :  { %1115 = vpow2.f32 %v754_v44 }
 0x234   :  { %v1116_v48 = vpop.eup %1115 }
 0x235   :  { %v756_v49 = vsel %vm749_vm7, %v1116_v48, 0.0 }
 0x236   :  { %757 = vadd.xlane.f32.xlu1 %v756_v49 }
 0x2bf   :  { %v758_v50 = vpop.xlane.xlu1 %757 }
 0x2c0   :  { %1117 = vlog2.f32 %v758_v50 }
 0x2cd   :  { %v1118_v51 = vpop.eup %1117 }
 0x2ce   :  { %v760_v55 = vmul.f32 0.6931472, %v1118_v51 }
 0x2d0   :  { %v761_v56 = vadd.f32 %v760_v55, %v752_v41 }
 0x2d2   :  { %v763_v60 = vsel %vm762_vm8, %v761_v56, 0.0 }
 0x2d3   :  { %764 = vadd.xlane.f32.xlu0 %v763_v60 }
 0x35c   :  { %v765_v61 = vpop.xlane.xlu0 %764 }
 0x35d   :  { %v766_v62 = vrot.slane %v765_v61, 4 }
 0x35f   :  { %v767_v4 = vadd.f32 %v766_v62, %v765_v61 }
 0x361   :  { %v768_v5 = vrot.slane %v767_v4, 2 }
 0x363   :  { %v769_v6 = vadd.f32 %v768_v5, %v767_v4 }
 0x365   :  { %v770_v18 = vrot.slane %v769_v6, 1 }
 0x367   :  { %v771_v30 = vadd.f32 %v770_v18, %v769_v6 }
 0x369   :  { %1106 = vpush %v771_v30 }
 0x39a   :  { %s1107_s13 = spop %1106 }
 0x39b   :  { %v773_v32 = vstv %s1107_s13 }
 0x39c   :  { %774 = vst [vmem:[#allocation2] sm:$0xff] %v773_v32 }
 0x39d   :  { %1130 = shalt.err (!%p1127_p4)
}
 0x39e   :  { %784 = dma.vmem_to_hbm [thread:$0]  %s782_s4, 128, %s1631_s6, [#allocation3]  }
 0x39f   :  { %1139 = dma.done.wait [#allocation3], 128  }
 0x3a0   :  { %1140 = vsyncadd [#allocation3], 4294967168 }
 0x3a1   :  { %788 = vsyncpa [#allocation3], 1 }

</bundles_post_ra>
